<compile_context>
chip_gen: v5e
topology: v5e:2x2
jax: 0.10.0
libtpu: 0.0.40
codegen_flags: <defaults>
</compile_context>

<pallas_src>
import functools

import jax
import jax.numpy as jnp
from jax.experimental import pallas as pl
from jax.experimental.pallas import tpu as pltpu

IN_FEATURES = 16 * 5 * 5   # 400
HIDDEN = 120
HIDDEN_PAD = 128           # lane-dense hidden width
OUT_PAD = 128              # lane-dense output width
ROW_ALIGN = 16             # bf16 sublane packing


def _round_up(v, m):
    return ((v + m - 1) // m) * m


def _subnet_fc_kernel(x_ref, w1_ref, b1_ref, w2_ref, b2_ref, out_ref):
    x = x_ref[...]                         # (TM, 400), expected bf16 from the producer
    if x.dtype != jnp.bfloat16:            # trace-time fallback only; no cost when bf16
        x = x.astype(jnp.bfloat16)
    h = jnp.dot(x, w1_ref[...], preferred_element_type=jnp.float32)     # (TM, 128) f32
    h = jnp.maximum(h + b1_ref[...], 0.0)                                # f32 epilogue
    y = jnp.dot(h.astype(jnp.bfloat16), w2_ref[...],
                preferred_element_type=jnp.float32)                      # (TM, 128) f32
    y = y + b2_ref[...]
    out_ref[...] = y.astype(out_ref.dtype)                               # bf16 store


def prepare_params(w1, b1, w2, b2):
    """One-time (outside the per-call jit): pad to lane-dense widths, weights -> bf16.

    w1: (400, 120), b1: (120,), w2: (120, C), b2: (C,). Zero padding is mathematically
    inert (zero weights/bias, ReLU(0)=0); the wrapper slices the real columns.
    """
    num_classes = w2.shape[1]
    w1_p = jnp.zeros((IN_FEATURES, HIDDEN_PAD), jnp.bfloat16).at[:, :HIDDEN].set(
        w1.astype(jnp.bfloat16))
    b1_p = jnp.zeros((1, HIDDEN_PAD), jnp.float32).at[:, :HIDDEN].set(
        b1.astype(jnp.float32))
    w2_p = jnp.zeros((HIDDEN_PAD, OUT_PAD), jnp.bfloat16).at[:HIDDEN, :num_classes].set(
        w2.astype(jnp.bfloat16))
    b2_p = jnp.zeros((1, OUT_PAD), jnp.float32).at[:, :num_classes].set(
        b2.astype(jnp.float32))
    return w1_p, b1_p, w2_p, b2_p


@functools.partial(jax.jit, static_argnames=("num_classes", "block_m"))
def subnet_fc_forward(x_nchw, w1_p, b1_p, w2_p, b2_p, *, num_classes, block_m=1024):
    """x_nchw: (N,16,5,5), ideally bf16 from the producer; padded params from prepare_params.

    block_m=1024 keeps the double-buffered bf16 input tile (~1 MiB/buffer after lane
    padding) + bf16 output tiles far under every generation's scoped VMEM limit while
    amortizing the ~0.35 us per-grid-step overhead. On v7x (3.2 TB/s HBM) block_m=2048
    is worth ~10-20% on very long batches; on v5e keep <=1536 or set vmem_limit_bytes.
    """
    n = x_nchw.shape[0]
    x2d = x_nchw.reshape(n, -1)                       # (N, 400) flatten(1) — free reshape
    assert x2d.shape[1] == IN_FEATURES

    # Align rows to 16 only (bf16 sublane packing); worst-case pad is 15 rows.
    n_al = _round_up(max(n, ROW_ALIGN), ROW_ALIGN)
    if n_al != n:
        x2d = jnp.pad(x2d, ((0, n_al - n), (0, 0)))

    # >=2 grid steps whenever possible (v7x megacore), capped at block_m; the last
    # block may be ragged — Pallas masks the out-of-bounds rows.
    tm = max(ROW_ALIGN, min(block_m, _round_up(pl.cdiv(n_al, 2), ROW_ALIGN)))
    grid = (pl.cdiv(n_al, tm),)

    # Advisory cost: real flops only, actual byte traffic (bf16 x / bf16 out).
    flops = 2 * n * (IN_FEATURES * HIDDEN + HIDDEN * num_classes)
    bytes_accessed = (n_al * IN_FEATURES * x2d.dtype.itemsize   # x in
                      + n_al * OUT_PAD * 2                      # bf16 out
                      + w1_p.size * 2 + w2_p.size * 2           # bf16 weights
                      + b1_p.size * 4 + b2_p.size * 4)          # f32 biases

    out = pl.pallas_call(
        _subnet_fc_kernel,
        out_shape=jax.ShapeDtypeStruct((n_al, OUT_PAD), jnp.bfloat16),
        grid=grid,
        in_specs=[
            pl.BlockSpec((tm, IN_FEATURES), lambda i: (i, 0)),   # x: tiled over rows
            pl.BlockSpec(w1_p.shape, lambda i: (0, 0)),          # weights VMEM-resident
            pl.BlockSpec(b1_p.shape, lambda i: (0, 0)),
            pl.BlockSpec(w2_p.shape, lambda i: (0, 0)),
            pl.BlockSpec(b2_p.shape, lambda i: (0, 0)),
        ],
        out_specs=pl.BlockSpec((tm, OUT_PAD), lambda i: (i, 0)),
        compiler_params=pltpu.CompilerParams(
            dimension_semantics=("parallel",)),
        cost_estimate=pl.CostEstimate(
            flops=flops, transcendentals=0, bytes_accessed=bytes_accessed),
    )(x2d, w1_p, b1_p, w2_p, b2_p)

    # Strip the row alignment padding and the lane-dense column padding.
    # (Padded rows contain garbage — never consume them directly.)
    return out[:n, :num_classes]


def init_params(key, num_classes):
    """Deterministic init matching nn.Linear shapes (U(-k, k), k=1/sqrt(fan_in)).
    Weights are returned pre-transposed to (in_features, out_features), f32."""
    k1, k2, k3, k4 = jax.random.split(key, 4)
    lim1 = 1.0 / jnp.sqrt(jnp.float32(IN_FEATURES))
    lim2 = 1.0 / jnp.sqrt(jnp.float32(HIDDEN))
    w1 = jax.random.uniform(k1, (IN_FEATURES, HIDDEN), jnp.float32, -lim1, lim1)
    b1 = jax.random.uniform(k2, (HIDDEN,), jnp.float32, -lim1, lim1)
    w2 = jax.random.uniform(k3, (HIDDEN, num_classes), jnp.float32, -lim2, lim2)
    b2 = jax.random.uniform(k4, (num_classes,), jnp.float32, -lim2, lim2)
    return w1, b1, w2, b2


if __name__ == "__main__":
    key = jax.random.PRNGKey(0)
    k_x, k_p = jax.random.split(key)

    num_classes = 10
    batch = 2
    # Input implied by fc1's 16*5*5 fan-in: NCHW (batch, 16, 5, 5).
    # The producer emits bf16 directly (no standalone f32->bf16 HBM round trip).
    x = jax.random.normal(k_x, (batch, 16, 5, 5), jnp.bfloat16)

    w1, b1, w2, b2 = init_params(k_p, num_classes)
    # One-time parameter prep (pad + bf16 cast), hoisted out of the per-call path.
    w1_p, b1_p, w2_p, b2_p = prepare_params(w1, b1, w2, b2)

    y = subnet_fc_forward(x, w1_p, b1_p, w2_p, b2_p, num_classes=num_classes)
    y = jax.block_until_ready(y)

    # Reference check in plain JAX (f32 math on the same bf16 input values).
    # Tolerance loosened because the kernel uses bf16 MXU operands / bf16 output.
    x2d = x.reshape(batch, -1).astype(jnp.float32)
    ref = jnp.maximum(x2d @ w1 + b1, 0.0) @ w2 + b2
    assert y.shape == (batch, num_classes)
    y_f32 = y.astype(jnp.float32)
    assert jnp.allclose(y_f32, ref, atol=5e-2, rtol=5e-2), \
        f"max abs err {jnp.max(jnp.abs(y_f32 - ref))}"

    print("KERNEL_OK")
</pallas_src>

<mosaic_0001>
module attributes {stable_mosaic.version = 11 : i64} {
  func.func @_subnet_fc_kernel(%arg0: i32, %arg1: memref<16x400xbf16, #tpu.memory_space<vmem>>, %arg2: memref<400x128xbf16, #tpu.memory_space<vmem>>, %arg3: memref<1x128xf32, #tpu.memory_space<vmem>>, %arg4: memref<128x128xbf16, #tpu.memory_space<vmem>>, %arg5: memref<1x128xf32, #tpu.memory_space<vmem>>, %arg6: memref<16x128xbf16, #tpu.memory_space<vmem>>) attributes {dimension_semantics = [#tpu.dimension_semantics<parallel>], iteration_bounds = array<i64: 1>, scalar_prefetch = 0 : i64, scratch_operands = 0 : i64, tpu.core_type = #tpu.core_type<tc>, window_params = [{transform_indices = @transform_0, window_bounds = array<i64: 16, 400>}, {pipeline_mode = #tpu.pipeline_mode<synchronous>, transform_indices = @transform_1, window_bounds = array<i64: 400, 128>}, {pipeline_mode = #tpu.pipeline_mode<synchronous>, transform_indices = @transform_2, window_bounds = array<i64: 1, 128>}, {pipeline_mode = #tpu.pipeline_mode<synchronous>, transform_indices = @transform_3, window_bounds = array<i64: 128, 128>}, {pipeline_mode = #tpu.pipeline_mode<synchronous>, transform_indices = @transform_4, window_bounds = array<i64: 1, 128>}, {transform_indices = @transform_5, window_bounds = array<i64: 16, 128>}]} {
    %c0 = arith.constant 0 : index
    %c0_0 = arith.constant 0 : index
    %0 = vector.load %arg1[%c0, %c0_0] : memref<16x400xbf16, #tpu.memory_space<vmem>>, vector<16x400xbf16>
    %c0_1 = arith.constant 0 : index
    %c0_2 = arith.constant 0 : index
    %1 = vector.load %arg2[%c0_1, %c0_2] : memref<400x128xbf16, #tpu.memory_space<vmem>>, vector<400x128xbf16>
    %cst = arith.constant dense<0.000000e+00> : vector<16x128xf32>
    %2 = tpu.matmul %0, %1, %cst {dimension_numbers = #tpu.dot_dimension_numbers<[1], [0], [0], [1], [0, 0, 1, 1], [], []>} : vector<16x400xbf16>, vector<400x128xbf16>, vector<16x128xf32> -> vector<16x128xf32>
    %c0_3 = arith.constant 0 : index
    %c0_4 = arith.constant 0 : index
    %3 = vector.load %arg3[%c0_3, %c0_4] : memref<1x128xf32, #tpu.memory_space<vmem>>, vector<1x128xf32>
    %4 = vector.broadcast %3 : vector<1x128xf32> to vector<16x128xf32>
    %5 = arith.addf %2, %4 : vector<16x128xf32>
    %cst_5 = arith.constant 0.000000e+00 : f32
    %6 = vector.broadcast %cst_5 : f32 to vector<16x128xf32>
    %7 = arith.maximumf %5, %6 : vector<16x128xf32>
    %8 = arith.truncf %7 : vector<16x128xf32> to vector<16x128xbf16>
    %c0_6 = arith.constant 0 : index
    %c0_7 = arith.constant 0 : index
    %9 = vector.load %arg4[%c0_6, %c0_7] : memref<128x128xbf16, #tpu.memory_space<vmem>>, vector<128x128xbf16>
    %cst_8 = arith.constant dense<0.000000e+00> : vector<16x128xf32>
    %10 = tpu.matmul %8, %9, %cst_8 {dimension_numbers = #tpu.dot_dimension_numbers<[1], [0], [0], [1], [0, 0, 1, 1], [], []>} : vector<16x128xbf16>, vector<128x128xbf16>, vector<16x128xf32> -> vector<16x128xf32>
    %c0_9 = arith.constant 0 : index
    %c0_10 = arith.constant 0 : index
    %11 = vector.load %arg5[%c0_9, %c0_10] : memref<1x128xf32, #tpu.memory_space<vmem>>, vector<1x128xf32>
    %12 = vector.broadcast %11 : vector<1x128xf32> to vector<16x128xf32>
    %13 = arith.addf %10, %12 : vector<16x128xf32>
    %14 = arith.truncf %13 : vector<16x128xf32> to vector<16x128xbf16>
    %c0_11 = arith.constant 0 : index
    %c0_12 = arith.constant 0 : index
    %15 = vector.load %arg6[%c0_11, %c0_12] : memref<16x128xbf16, #tpu.memory_space<vmem>>, vector<16x128xbf16>
    tpu.vector_store %arg6[%c0_11, %c0_12], %14 {strides = array<i32>} : memref<16x128xbf16, #tpu.memory_space<vmem>>, vector<16x128xbf16>,
    return
  }
  func.func @transform_0(%arg0: i32) -> (i32, i32) {
    %c0_i32 = arith.constant 0 : i32
    %c0_i32_0 = arith.constant 0 : i32
    return %arg0, %c0_i32 : i32, i32
  }
  func.func @transform_1(%arg0: i32) -> (i32, i32) {
    %c0_i32 = arith.constant 0 : i32
    %c0_i32_0 = arith.constant 0 : i32
    %c0_i32_1 = arith.constant 0 : i32
    return %c0_i32, %c0_i32_0 : i32, i32
  }
  func.func @transform_2(%arg0: i32) -> (i32, i32) {
    %c0_i32 = arith.constant 0 : i32
    %c0_i32_0 = arith.constant 0 : i32
    %c0_i32_1 = arith.constant 0 : i32
    return %c0_i32, %c0_i32_0 : i32, i32
  }
  func.func @transform_3(%arg0: i32) -> (i32, i32) {
    %c0_i32 = arith.constant 0 : i32
    %c0_i32_0 = arith.constant 0 : i32
    %c0_i32_1 = arith.constant 0 : i32
    return %c0_i32, %c0_i32_0 : i32, i32
  }
  func.func @transform_4(%arg0: i32) -> (i32, i32) {
    %c0_i32 = arith.constant 0 : i32
    %c0_i32_0 = arith.constant 0 : i32
    %c0_i32_1 = arith.constant 0 : i32
    return %c0_i32, %c0_i32_0 : i32, i32
  }
  func.func @transform_5(%arg0: i32) -> (i32, i32) {
    %c0_i32 = arith.constant 0 : i32
    %c0_i32_0 = arith.constant 0 : i32
    return %arg0, %c0_i32 : i32, i32
  }
}

</mosaic_0001>

<bundles_post_ra>
// kernel: subnet_fc_forward.1
= control target key start
LH: loop header
LB: loop body
LE: loop exit
PB: predicated region body
PF: predicated region fallthrough
CT: control target
= control target key end

     0   :  { %vm248_vm0 = vcmask 130048   ;;  %s756_s1 = inlined_call_operand.vmem [shape: bf16[400,128], index: 1, kind: input, shape index: {}]   ;;  %s757_s0 = inlined_call_operand.vmem [shape: bf16[16,400], index: 0, kind: input, shape index: {}]   ;;  %s758_s3 = inlined_call_operand.vmem [shape: bf16[128,128], index: 3, kind: input, shape index: {}]   ;;  %s759_s2 = inlined_call_operand.vmem [shape: f32[1,128], index: 2, kind: input, shape index: {}]   ;;  %s760_s4 = inlined_call_operand.vmem [shape: f32[1,128], index: 4, kind: input, shape index: {}]   ;;  %s761_s5 = inlined_call_operand.vmem [shape: bf16[16,128], index: 5, kind: output, shape index: {}]  }
   0x1   :  { %v561_v0 = vld [vmem:[%s756_s1 + $0x38] sm:$0xff]  ;;  %v560_v3 = vld [vmem:[%s756_s1 + $0x30] sm:$0xff]  ;;  %v559_v6 = vld [vmem:[%s756_s1 + $0x28] sm:$0xff] }
   0x2   :  { %v569_v1 = vld [vmem:[%s756_s1 + $0x78] sm:$0xff]  ;;  %252 = vmatpush.bf16.msra.mxu0 %v561_v0  ;;  %v568_v4 = vld [vmem:[%s756_s1 + $0x70] sm:$0xff]  ;;  %v567_v7 = vld [vmem:[%s756_s1 + $0x68] sm:$0xff] }
   0x3   :  { %v577_v2 = vld [vmem:[%s756_s1 + $0xb8] sm:$0xff]  ;;  %266 = vmatpush.bf16.msra.mxu1 %v569_v1  ;;  %v576_v5 = vld [vmem:[%s756_s1 + $0xb0] sm:$0xff]  ;;  %v578_v8 = vld [vmem:[%s756_s1 + $0xc0] sm:$0xff] }
   0x4   :  { %280 = vmatpush.bf16.msra.mxu2 %v577_v2  ;;  %v575_v9 = vld [vmem:[%s756_s1 + $0xa8] sm:$0xff]  ;;  %v413_v11 = vld [vmem:[%s757_s0 + $0x18] sm:$0xf0]  ;;  %301 = vmatpush.bf16.msra.mxu3 %v578_v8  ;;  %v558_v13 = vld [vmem:[%s756_s1 + $0x20] sm:$0xff] }
   0x5   :  { %v551_v10 = vld [vmem:[%s757_s0 + $0xc] sm:$0xf]  ;;  %v566_v14 = vld [vmem:[%s756_s1 + $0x60] sm:$0xff]  ;;  %v586_v16 = vld [vmem:[%s758_s3 + $0x38] sm:$0xff] }
   0x6   :  { %253 = vmatpush.bf16.msra.mxu0 %v560_v3  ;;  %v416_v12 = vor.u32 %v551_v10, %v413_v11  ;;  %v574_v15 = vld [vmem:[%s756_s1 + $0xa0] sm:$0xff]  ;;  %v585_v17 = vld [vmem:[%s758_s3 + $0x30] sm:$0xff]  ;;  %v557_v18 = vld [vmem:[%s756_s1 + $0x18] sm:$0xff] }
   0x7   :  { %267 = vmatpush.bf16.msra.mxu1 %v568_v4  ;;  %v565_v19 = vld [vmem:[%s756_s1 + $0x58] sm:$0xff]  ;;  %v556_v21 = vld [vmem:[%s756_s1 + $0x10] sm:$0xff]  ;;  %v555_v24 = vld [vmem:[%s756_s1 + $0x8] sm:$0xff] }
   0x8   :  { %281 = vmatpush.bf16.msra.mxu2 %v576_v5  ;;  %517 = vmatmul.msk.bf16.vlgmr.msra.gmra.mxu3 %vm248_vm0, %v416_v12  ;;  %v573_v20 = vld [vmem:[%s756_s1 + $0x98] sm:$0xff]  ;;  %v564_v22 = vld [vmem:[%s756_s1 + $0x50] sm:$0xff]  ;;  %v563_v25 = vld [vmem:[%s756_s1 + $0x48] sm:$0xff] }
   0x9   :  { %379 = vmatpush.bf16.msrb.mxu3 %v586_v16  ;;  %v572_v23 = vld [vmem:[%s756_s1 + $0x90] sm:$0xff]  ;;  %v571_v26 = vld [vmem:[%s756_s1 + $0x88] sm:$0xff]  ;;  %v554_v27 = vld [vmem:[%s756_s1] sm:$0xff] }
   0xa   :  { %254 = vmatpush.bf16.msra.mxu0 %v559_v6  ;;  %v562_v28 = vld [vmem:[%s756_s1 + $0x40] sm:$0xff]  ;;  %v552_v30 = vld [vmem:[%s757_s0 + $0xc] sm:$0xf0]  ;;  %v405_v32 = vld [vmem:[%s757_s0 + $0x10] sm:$0xf0] }
   0xb   :  { %268 = vmatpush.bf16.msra.mxu1 %v567_v7  ;;  %v403_v29 = vld [vmem:[%s757_s0] sm:$0xf]  ;;  %v550_v31 = vld [vmem:[%s757_s0 + $0x4] sm:$0xf]  ;;  %v411_v34 = vld [vmem:[%s757_s0 + $0x8] sm:$0xf] }
   0xc   :  { %282 = vmatpush.bf16.msra.mxu2 %v575_v9  ;;  %v570_v33 = vld [vmem:[%s756_s1 + $0x80] sm:$0xff]  ;;  %v553_v35 = vld [vmem:[%s757_s0 + $0x14] sm:$0xf0]  ;;  %v404_v36 = vor.u32 %v552_v30, %v403_v29  ;;  %v408_v37 = vor.u32 %v550_v31, %v405_v32  ;;  %v584_v39 = vld [vmem:[%s758_s3 + $0x28] sm:$0xff] }
   0xd   :  { %380 = vmatpush.bf16.msrb.mxu3 %v585_v17  ;;  %v412_v38 = vor.u32 %v553_v35, %v411_v34  ;;  %v583_v40 = vld [vmem:[%s758_s3 + $0x20] sm:$0xff]  ;;  %v582_v41 = vld [vmem:[%s758_s3 + $0x18] sm:$0xff]  ;;  %v581_v42 = vld [vmem:[%s758_s3 + $0x10] sm:$0xff] }
   0xe   :  { %255 = vmatpush.bf16.msra.mxu0 %v558_v13  ;;  %v580_v43 = vld [vmem:[%s758_s3 + $0x8] sm:$0xff]  ;;  %v579_v44 = vld [vmem:[%s758_s3] sm:$0xff] }
   0xf   :  { %269 = vmatpush.bf16.msra.mxu1 %v566_v14  ;;  %v592_v45 = vld [vmem:[%s759_s2] ss:$0 sm:$0xff] }
  0x10   :  { %283 = vmatpush.bf16.msra.mxu2 %v574_v15  ;;  %v593_v2 = vld [vmem:[%s760_s4] ss:$0 sm:$0xff] }
  0x11   :  { %381 = vmatpush.bf16.msrb.mxu3 %v584_v39 }
  0x12   :  { %256 = vmatpush.bf16.msra.mxu0 %v557_v18 }
  0x13   :  { %270 = vmatpush.bf16.msra.mxu1 %v565_v19 }
  0x14   :  { %284 = vmatpush.bf16.msra.mxu2 %v573_v20 }
  0x15   :  { %382 = vmatpush.bf16.msrb.mxu3 %v583_v40 }
  0x16   :  { %257 = vmatpush.bf16.msra.mxu0 %v556_v21 }
  0x17   :  { %271 = vmatpush.bf16.msra.mxu1 %v564_v22 }
  0x18   :  { %285 = vmatpush.bf16.msra.mxu2 %v572_v23 }
  0x19   :  { %383 = vmatpush.bf16.msrb.mxu3 %v582_v41 }
  0x1a   :  { %258 = vmatpush.bf16.msra.mxu0 %v555_v24 }
  0x1b   :  { %272 = vmatpush.bf16.msra.mxu1 %v563_v25 }
  0x1c   :  { %286 = vmatpush.bf16.msra.mxu2 %v571_v26 }
  0x1d   :  { %384 = vmatpush.bf16.msrb.mxu3 %v581_v42 }
  0x1e   :  { %259 = vmatpush.bf16.msra.mxu0 %v554_v27 }
  0x1f   :  { %273 = vmatpush.bf16.msra.mxu1 %v562_v28 }
  0x20   :  { %287 = vmatpush.bf16.msra.mxu2 %v570_v33 }
  0x21   :  { %260 = vmatmul.bf16.vlgmr.msra.gmra.mxu0 %v404_v36  ;;  %385 = vmatpush.bf16.msrb.mxu3 %v580_v43 }
  0x22   :  { %274 = vmatmul.bf16.vlgmr.msra.gmra.mxu1 %v408_v37 }
  0x23   :  { %288 = vmatmul.bf16.vlgmr.msra.gmra.mxu2 %v412_v38 }
  0x25   :  { %386 = vmatpush.bf16.msrb.mxu3 %v579_v44 }
  0x8b   :  { %v303_v49 = vpop.f32.mrf.mxu3 }
  0x93   :  { %v305_v60 = vpop.f32.mrf.mxu3 }
  0x9e   :  { %v261_v46 = vpop.f32.mrf.mxu0 }
  0x9f   :  { %v275_v47 = vpop.f32.mrf.mxu1  ;;  %v262_v48 = vadd.f32 %v592_v45, %v261_v46 }
  0xa1   :  { %v276_v51 = vadd.f32 %v275_v47, %v262_v48 }
  0xa6   :  { %v289_v50 = vpop.f32.mrf.mxu2  ;;  %v263_v52 = vpop.f32.mrf.mxu0 }
  0xa7   :  { %v264_v53 = vadd.f32 %v592_v45, %v263_v52  ;;  %v290_v54 = vadd.f32 %v289_v50, %v276_v51  ;;  %v277_v55 = vpop.f32.mrf.mxu1 }
  0xa9   :  { %v278_v56 = vadd.f32 %v277_v55, %v264_v53  ;;  %v304_v58 = vadd.f32 %v303_v49, %v290_v54 }
  0xab   :  { %v308_v62 = vmax.f32 %v304_v58, 0.0 }
  0xae   :  { %v291_v57 = vpop.f32.mrf.mxu2 }
  0xaf   :  { %v292_v59 = vadd.f32 %v291_v57, %v278_v56 }
  0xb1   :  { %v306_v61 = vadd.f32 %v305_v60, %v292_v59 }
  0xb3   :  { %v309_v63 = vmax.f32 %v306_v61, 0.0 }
  0xb5   :  { %v310_v0 = vpack.c.bf16 %v309_v63, %v308_v62 }
  0xb7   :  { %387 = vmatmul.bf16.vlgmr.msrb.gmra.mxu3 %v310_v0 }
 0x13a   :  { %v388_v1 = vpop.f32.mrf.mxu3 }
 0x13b   :  { %v389_v4 = vadd.f32 %v593_v2, %v388_v1 }
 0x142   :  { %v390_v3 = vpop.f32.mrf.mxu3 }
 0x143   :  { %v391_v5 = vadd.f32 %v593_v2, %v390_v3 }
 0x145   :  { %v590_v6 = vpack.c.bf16 %v391_v5, %v389_v4 }
 0x147   :  { %591 = vst [vmem:[%s761_s5] sm:$0xff] %v590_v6  }

</bundles_post_ra>
